<compile_context>
chip_gen: v5e
topology: v5e:2x2
jax: 0.10.0
libtpu: 0.0.40
codegen_flags: <defaults>
</compile_context>

<pallas_src>
import functools

import jax
import jax.numpy as jnp
import numpy as np
from jax import lax
from jax.experimental import pallas as pl
from jax.experimental.pallas import tpu as pltpu

BN_EPS = 1e-5
LEAKY_SLOPE = 0.1


# ----------------------------------------------------------------------------
# Fused kernel: num_repeat x [1x1 conv -> 3x3 conv], all in VMEM per image.
# ----------------------------------------------------------------------------
def _conv_block_kernel(x_ref, w1_ref, b1_ref, s_ref, a_ref, b3_ref, o_ref,
                       *, num_repeat):
    # x_ref : (1, H, W*C)        lane-dense activation slab for one image
    # w1_ref: (R, W*C, W*C)      block-diag kron(I_W, W1^T), BN scale folded in
    # b1_ref: (R, 1, W*C)        folded BN bias for the 1x1 (tiled over W)
    # s_ref : (3, H, H)          row-shift matrices (encode the 3x3 H-padding)
    # a_ref : (R, 3*W*C, W*C)    banded 3x3 weights (encode the W-padding)
    # b3_ref: (R, 1, W*C)        folded BN bias for the 3x3 (tiled over W)
    x = x_ref[0]                                            # (H, W*C)
    for r in range(num_repeat):                             # static unroll
        # ---- Conv 1x1 + folded BN + LeakyReLU: one K=W*C MXU dot ----
        y = jnp.dot(x, w1_ref[r], preferred_element_type=jnp.float32)
        y = y + b1_ref[r]
        y = jnp.where(y > 0, y, LEAKY_SLOPE * y)
        # ---- Conv 3x3 + folded BN + LeakyReLU, entirely in VMEM ----
        # Row-shifted copies of y (zero rows at the top/bottom image border).
        shifted = [jnp.dot(s_ref[k], y, preferred_element_type=jnp.float32)
                   for k in range(3)]
        ycat = jnp.concatenate(shifted, axis=1)             # (H, 3*W*C)
        y = jnp.dot(ycat, a_ref[r], preferred_element_type=jnp.float32)
        y = y + b3_ref[r]
        y = jnp.where(y > 0, y, LEAKY_SLOPE * y)
        x = y
    o_ref[0] = x.astype(o_ref.dtype)


# ----------------------------------------------------------------------------
# Wrapper-side parameter preparation (BN folding + lane-dense matmul operands)
# ----------------------------------------------------------------------------
def prepare_fused_params(params, H, W):
    C = params[0][0]["w"].shape[0]
    WC = W * C
    w1_list, b1_list, a_list, b3_list = [], [], [], []
    for conv1, conv3 in params:
        # 1x1: weight (Cout, Cin, 1, 1); fold BN scale, build block-diagonal.
        m1 = conv1["w"].reshape(C, C) * conv1["scale"][:, None]        # [co, ci]
        w1_list.append(jnp.kron(jnp.eye(W, dtype=m1.dtype), m1.T))     # (WC, WC)
        b1_list.append(jnp.tile(conv1["bias"], W)[None, :])            # (1, WC)

        # 3x3: weight (Cout, Cin, 3, 3); fold BN scale, build banded matrices.
        m3 = conv3["w"] * conv3["scale"][:, None, None, None]          # [co,ci,ky,kx]
        a_ky = []
        for ky in range(3):
            a = jnp.zeros((WC, WC), m3.dtype)
            for kx in range(3):
                # block at (w + kx - 1, w) carries m3[:, :, ky, kx]^T
                a = a + jnp.kron(jnp.eye(W, k=-(kx - 1), dtype=m3.dtype),
                                 m3[:, :, ky, kx].T)
            a_ky.append(a)
        a_list.append(jnp.concatenate(a_ky, axis=0))                   # (3*WC, WC)
        b3_list.append(jnp.tile(conv3["bias"], W)[None, :])            # (1, WC)

    # Row-shift matrices: (S_ky @ Y)[h] = Y[h + ky - 1] (zero rows at borders).
    s = jnp.stack([jnp.eye(H, k=ky - 1, dtype=jnp.float32) for ky in range(3)])
    return (jnp.stack(w1_list), jnp.stack(b1_list), s,
            jnp.stack(a_list), jnp.stack(b3_list))


def conv_block_forward(x_nchw, params):
    """ConvBlock.forward: num_repeat x [Conv1x1 -> Conv3x3] (BN + LeakyReLU)."""
    B, C, H, W = x_nchw.shape
    R = len(params)
    WC = W * C
    w1, b1, s, a, b3 = prepare_fused_params(params, H, W)

    # NCHW -> (B, H, W*C): the only XLA-side relayout (once per block, not per conv).
    xb = jnp.transpose(x_nchw, (0, 2, 3, 1)).reshape(B, H, WC)

    out = pl.pallas_call(
        functools.partial(_conv_block_kernel, num_repeat=R),
        out_shape=jax.ShapeDtypeStruct((B, H, WC), x_nchw.dtype),
        grid_spec=pltpu.PrefetchScalarGridSpec(
            num_scalar_prefetch=0,
            grid=(B,),
            in_specs=[
                pl.BlockSpec((1, H, WC), lambda b: (b, 0, 0)),
                pl.BlockSpec((R, WC, WC), lambda b: (0, 0, 0)),
                pl.BlockSpec((R, 1, WC), lambda b: (0, 0, 0)),
                pl.BlockSpec((3, H, H), lambda b: (0, 0, 0)),
                pl.BlockSpec((R, 3 * WC, WC), lambda b: (0, 0, 0)),
                pl.BlockSpec((R, 1, WC), lambda b: (0, 0, 0)),
            ],
            out_specs=pl.BlockSpec((1, H, WC), lambda b: (b, 0, 0)),
        ),
        compiler_params=pltpu.CompilerParams(
            dimension_semantics=("parallel",),       # shards images over TCs (v7x)
            vmem_limit_bytes=32 * 1024 * 1024,
        ),
    )(xb, w1, b1, s, a, b3)

    return jnp.transpose(out.reshape(B, H, W, C), (0, 3, 1, 2))


# ----------------------------------------------------------------------------
# Deterministic parameter init (Conv2d weight OIHW + folded eval-mode BN)
# ----------------------------------------------------------------------------
def _init_conv(key, C, k):
    k1, k2, k3, k4, k5 = jax.random.split(key, 5)
    fan_in = C * k * k
    w = jax.random.normal(k1, (C, C, k, k), jnp.float32) / np.sqrt(fan_in)  # OIHW
    gamma = 1.0 + 0.1 * jax.random.normal(k2, (C,), jnp.float32)
    beta = 0.1 * jax.random.normal(k3, (C,), jnp.float32)
    mean = 0.1 * jax.random.normal(k4, (C,), jnp.float32)
    var = jnp.abs(jax.random.normal(k5, (C,), jnp.float32)) + 0.5
    scale = gamma / jnp.sqrt(var + BN_EPS)
    bias = beta - mean * scale
    return {"w": w, "scale": scale, "bias": bias}


def init_conv_block_params(key, C, num_repeat):
    params = []
    for _ in range(num_repeat):
        k1, k2, key = jax.random.split(key, 3)
        params.append((_init_conv(k1, C, 1), _init_conv(k2, C, 3)))
    return params


# ----------------------------------------------------------------------------
# Pure-JAX reference (independent of the kernel's matrix construction)
# ----------------------------------------------------------------------------
def _ref_conv(x, p, padding):
    y = lax.conv_general_dilated(x, p["w"], (1, 1), padding,
                                 dimension_numbers=("NCHW", "OIHW", "NCHW"))
    y = y * p["scale"][None, :, None, None] + p["bias"][None, :, None, None]
    return jnp.where(y > 0, y, LEAKY_SLOPE * y)


def conv_block_reference(x_nchw, params):
    x = x_nchw
    for conv1, conv3 in params:
        x = _ref_conv(x, conv1, "VALID")   # 1x1, pad=0
        x = _ref_conv(x, conv3, "SAME")    # 3x3, pad=1
    return x


# ----------------------------------------------------------------------------
if __name__ == "__main__":
    B, C, H, W = 2, 8, 16, 16      # in_channels=8 -> W*C = 128 (lane-dense)
    NUM_REPEAT = 2

    key = jax.random.PRNGKey(0)
    kx, kp = jax.random.split(key)
    x = jax.random.normal(kx, (B, C, H, W), jnp.float32)   # NCHW, like PyTorch
    params = init_conv_block_params(kp, C, NUM_REPEAT)

    fwd = jax.jit(conv_block_forward)
    out = jax.block_until_ready(fwd(x, params))

    ref = jax.block_until_ready(conv_block_reference(x, params))
    np.testing.assert_allclose(np.asarray(out), np.asarray(ref),
                               rtol=5e-4, atol=5e-4)
    assert out.shape == (B, C, H, W)

    print("KERNEL_OK")
</pallas_src>

<mosaic_0001>
module attributes {stable_mosaic.version = 11 : i64} {
  func.func @_conv_block_kernel(%arg0: i32, %arg1: memref<1x16x128xf32, #tpu.memory_space<vmem>>, %arg2: memref<2x128x128xf32, #tpu.memory_space<vmem>>, %arg3: memref<2x1x128xf32, #tpu.memory_space<vmem>>, %arg4: memref<3x16x16xf32, #tpu.memory_space<vmem>>, %arg5: memref<2x384x128xf32, #tpu.memory_space<vmem>>, %arg6: memref<2x1x128xf32, #tpu.memory_space<vmem>>, %arg7: memref<1x16x128xf32, #tpu.memory_space<vmem>>) attributes {dimension_semantics = [#tpu.dimension_semantics<parallel>], iteration_bounds = array<i64: 2>, scalar_prefetch = 0 : i64, scratch_operands = 0 : i64, tpu.core_type = #tpu.core_type<tc>, window_params = [{transform_indices = @transform_0, window_bounds = array<i64: 1, 16, 128>}, {pipeline_mode = #tpu.pipeline_mode<synchronous>, transform_indices = @transform_1, window_bounds = array<i64: 2, 128, 128>}, {pipeline_mode = #tpu.pipeline_mode<synchronous>, transform_indices = @transform_2, window_bounds = array<i64: 2, 1, 128>}, {pipeline_mode = #tpu.pipeline_mode<synchronous>, transform_indices = @transform_3, window_bounds = array<i64: 3, 16, 16>}, {pipeline_mode = #tpu.pipeline_mode<synchronous>, transform_indices = @transform_4, window_bounds = array<i64: 2, 384, 128>}, {pipeline_mode = #tpu.pipeline_mode<synchronous>, transform_indices = @transform_5, window_bounds = array<i64: 2, 1, 128>}, {transform_indices = @transform_6, window_bounds = array<i64: 1, 16, 128>}]} {
    %c0 = arith.constant 0 : index
    %c0_0 = arith.constant 0 : index
    %c0_1 = arith.constant 0 : index
    %0 = vector.load %arg1[%c0, %c0_0, %c0_1] : memref<1x16x128xf32, #tpu.memory_space<vmem>>, vector<1x16x128xf32>
    %1 = vector.shape_cast %0 : vector<1x16x128xf32> to vector<16x128xf32>
    %c0_2 = arith.constant 0 : index
    %c0_3 = arith.constant 0 : index
    %c0_4 = arith.constant 0 : index
    %2 = vector.load %arg2[%c0_2, %c0_3, %c0_4] : memref<2x128x128xf32, #tpu.memory_space<vmem>>, vector<1x128x128xf32>
    %3 = vector.shape_cast %2 : vector<1x128x128xf32> to vector<128x128xf32>
    %cst = arith.constant dense<0.000000e+00> : vector<16x128xf32>
    %4 = tpu.matmul %1, %3, %cst {dimension_numbers = #tpu.dot_dimension_numbers<[1], [0], [0], [1], [0, 0, 1, 1], [], []>} : vector<16x128xf32>, vector<128x128xf32>, vector<16x128xf32> -> vector<16x128xf32>
    %c0_5 = arith.constant 0 : index
    %c0_6 = arith.constant 0 : index
    %c0_7 = arith.constant 0 : index
    %5 = vector.load %arg3[%c0_5, %c0_6, %c0_7] : memref<2x1x128xf32, #tpu.memory_space<vmem>>, vector<1x1x128xf32>
    %6 = vector.shape_cast %5 : vector<1x1x128xf32> to vector<1x128xf32>
    %7 = vector.broadcast %6 : vector<1x128xf32> to vector<16x128xf32>
    %8 = arith.addf %4, %7 : vector<16x128xf32>
    %cst_8 = arith.constant 0.000000e+00 : f32
    %9 = vector.broadcast %cst_8 : f32 to vector<16x128xf32>
    %10 = arith.cmpf ogt, %8, %9 : vector<16x128xf32>
    %cst_9 = arith.constant 1.000000e-01 : f32
    %11 = vector.broadcast %cst_9 : f32 to vector<16x128xf32>
    %12 = arith.mulf %11, %8 : vector<16x128xf32>
    %13 = arith.select %10, %8, %12 : vector<16x128xi1>, vector<16x128xf32>
    %c0_10 = arith.constant 0 : index
    %c0_11 = arith.constant 0 : index
    %c0_12 = arith.constant 0 : index
    %14 = vector.load %arg4[%c0_10, %c0_11, %c0_12] : memref<3x16x16xf32, #tpu.memory_space<vmem>>, vector<1x16x16xf32>
    %15 = vector.shape_cast %14 : vector<1x16x16xf32> to vector<16x16xf32>
    %cst_13 = arith.constant dense<0.000000e+00> : vector<16x128xf32>
    %16 = tpu.matmul %15, %13, %cst_13 {dimension_numbers = #tpu.dot_dimension_numbers<[1], [0], [0], [1], [0, 0, 1, 1], [], []>} : vector<16x16xf32>, vector<16x128xf32>, vector<16x128xf32> -> vector<16x128xf32>
    %c1 = arith.constant 1 : index
    %c0_14 = arith.constant 0 : index
    %c0_15 = arith.constant 0 : index
    %17 = vector.load %arg4[%c1, %c0_14, %c0_15] : memref<3x16x16xf32, #tpu.memory_space<vmem>>, vector<1x16x16xf32>
    %18 = vector.shape_cast %17 : vector<1x16x16xf32> to vector<16x16xf32>
    %cst_16 = arith.constant dense<0.000000e+00> : vector<16x128xf32>
    %19 = tpu.matmul %18, %13, %cst_16 {dimension_numbers = #tpu.dot_dimension_numbers<[1], [0], [0], [1], [0, 0, 1, 1], [], []>} : vector<16x16xf32>, vector<16x128xf32>, vector<16x128xf32> -> vector<16x128xf32>
    %c2 = arith.constant 2 : index
    %c0_17 = arith.constant 0 : index
    %c0_18 = arith.constant 0 : index
    %20 = vector.load %arg4[%c2, %c0_17, %c0_18] : memref<3x16x16xf32, #tpu.memory_space<vmem>>, vector<1x16x16xf32>
    %21 = vector.shape_cast %20 : vector<1x16x16xf32> to vector<16x16xf32>
    %cst_19 = arith.constant dense<0.000000e+00> : vector<16x128xf32>
    %22 = tpu.matmul %21, %13, %cst_19 {dimension_numbers = #tpu.dot_dimension_numbers<[1], [0], [0], [1], [0, 0, 1, 1], [], []>} : vector<16x16xf32>, vector<16x128xf32>, vector<16x128xf32> -> vector<16x128xf32>
    %23 = tpu.concatenate %16, %19, %22 in 1 : vector<16x128xf32>, vector<16x128xf32>, vector<16x128xf32> -> vector<16x384xf32>
    %c0_20 = arith.constant 0 : index
    %c0_21 = arith.constant 0 : index
    %c0_22 = arith.constant 0 : index
    %24 = vector.load %arg5[%c0_20, %c0_21, %c0_22] : memref<2x384x128xf32, #tpu.memory_space<vmem>>, vector<1x384x128xf32>
    %25 = vector.shape_cast %24 : vector<1x384x128xf32> to vector<384x128xf32>
    %cst_23 = arith.constant dense<0.000000e+00> : vector<16x128xf32>
    %26 = tpu.matmul %23, %25, %cst_23 {dimension_numbers = #tpu.dot_dimension_numbers<[1], [0], [0], [1], [0, 0, 1, 1], [], []>} : vector<16x384xf32>, vector<384x128xf32>, vector<16x128xf32> -> vector<16x128xf32>
    %c0_24 = arith.constant 0 : index
    %c0_25 = arith.constant 0 : index
    %c0_26 = arith.constant 0 : index
    %27 = vector.load %arg6[%c0_24, %c0_25, %c0_26] : memref<2x1x128xf32, #tpu.memory_space<vmem>>, vector<1x1x128xf32>
    %28 = vector.shape_cast %27 : vector<1x1x128xf32> to vector<1x128xf32>
    %29 = vector.broadcast %28 : vector<1x128xf32> to vector<16x128xf32>
    %30 = arith.addf %26, %29 : vector<16x128xf32>
    %cst_27 = arith.constant 0.000000e+00 : f32
    %31 = vector.broadcast %cst_27 : f32 to vector<16x128xf32>
    %32 = arith.cmpf ogt, %30, %31 : vector<16x128xf32>
    %cst_28 = arith.constant 1.000000e-01 : f32
    %33 = vector.broadcast %cst_28 : f32 to vector<16x128xf32>
    %34 = arith.mulf %33, %30 : vector<16x128xf32>
    %35 = arith.select %32, %30, %34 : vector<16x128xi1>, vector<16x128xf32>
    %c1_29 = arith.constant 1 : index
    %c0_30 = arith.constant 0 : index
    %c0_31 = arith.constant 0 : index
    %36 = vector.load %arg2[%c1_29, %c0_30, %c0_31] : memref<2x128x128xf32, #tpu.memory_space<vmem>>, vector<1x128x128xf32>
    %37 = vector.shape_cast %36 : vector<1x128x128xf32> to vector<128x128xf32>
    %cst_32 = arith.constant dense<0.000000e+00> : vector<16x128xf32>
    %38 = tpu.matmul %35, %37, %cst_32 {dimension_numbers = #tpu.dot_dimension_numbers<[1], [0], [0], [1], [0, 0, 1, 1], [], []>} : vector<16x128xf32>, vector<128x128xf32>, vector<16x128xf32> -> vector<16x128xf32>
    %c1_33 = arith.constant 1 : index
    %c0_34 = arith.constant 0 : index
    %c0_35 = arith.constant 0 : index
    %39 = vector.load %arg3[%c1_33, %c0_34, %c0_35] : memref<2x1x128xf32, #tpu.memory_space<vmem>>, vector<1x1x128xf32>
    %40 = vector.shape_cast %39 : vector<1x1x128xf32> to vector<1x128xf32>
    %41 = vector.broadcast %40 : vector<1x128xf32> to vector<16x128xf32>
    %42 = arith.addf %38, %41 : vector<16x128xf32>
    %cst_36 = arith.constant 0.000000e+00 : f32
    %43 = vector.broadcast %cst_36 : f32 to vector<16x128xf32>
    %44 = arith.cmpf ogt, %42, %43 : vector<16x128xf32>
    %cst_37 = arith.constant 1.000000e-01 : f32
    %45 = vector.broadcast %cst_37 : f32 to vector<16x128xf32>
    %46 = arith.mulf %45, %42 : vector<16x128xf32>
    %47 = arith.select %44, %42, %46 : vector<16x128xi1>, vector<16x128xf32>
    %c0_38 = arith.constant 0 : index
    %c0_39 = arith.constant 0 : index
    %c0_40 = arith.constant 0 : index
    %48 = vector.load %arg4[%c0_38, %c0_39, %c0_40] : memref<3x16x16xf32, #tpu.memory_space<vmem>>, vector<1x16x16xf32>
    %49 = vector.shape_cast %48 : vector<1x16x16xf32> to vector<16x16xf32>
    %cst_41 = arith.constant dense<0.000000e+00> : vector<16x128xf32>
    %50 = tpu.matmul %49, %47, %cst_41 {dimension_numbers = #tpu.dot_dimension_numbers<[1], [0], [0], [1], [0, 0, 1, 1], [], []>} : vector<16x16xf32>, vector<16x128xf32>, vector<16x128xf32> -> vector<16x128xf32>
    %c1_42 = arith.constant 1 : index
    %c0_43 = arith.constant 0 : index
    %c0_44 = arith.constant 0 : index
    %51 = vector.load %arg4[%c1_42, %c0_43, %c0_44] : memref<3x16x16xf32, #tpu.memory_space<vmem>>, vector<1x16x16xf32>
    %52 = vector.shape_cast %51 : vector<1x16x16xf32> to vector<16x16xf32>
    %cst_45 = arith.constant dense<0.000000e+00> : vector<16x128xf32>
    %53 = tpu.matmul %52, %47, %cst_45 {dimension_numbers = #tpu.dot_dimension_numbers<[1], [0], [0], [1], [0, 0, 1, 1], [], []>} : vector<16x16xf32>, vector<16x128xf32>, vector<16x128xf32> -> vector<16x128xf32>
    %c2_46 = arith.constant 2 : index
    %c0_47 = arith.constant 0 : index
    %c0_48 = arith.constant 0 : index
    %54 = vector.load %arg4[%c2_46, %c0_47, %c0_48] : memref<3x16x16xf32, #tpu.memory_space<vmem>>, vector<1x16x16xf32>
    %55 = vector.shape_cast %54 : vector<1x16x16xf32> to vector<16x16xf32>
    %cst_49 = arith.constant dense<0.000000e+00> : vector<16x128xf32>
    %56 = tpu.matmul %55, %47, %cst_49 {dimension_numbers = #tpu.dot_dimension_numbers<[1], [0], [0], [1], [0, 0, 1, 1], [], []>} : vector<16x16xf32>, vector<16x128xf32>, vector<16x128xf32> -> vector<16x128xf32>
    %57 = tpu.concatenate %50, %53, %56 in 1 : vector<16x128xf32>, vector<16x128xf32>, vector<16x128xf32> -> vector<16x384xf32>
    %c1_50 = arith.constant 1 : index
    %c0_51 = arith.constant 0 : index
    %c0_52 = arith.constant 0 : index
    %58 = vector.load %arg5[%c1_50, %c0_51, %c0_52] : memref<2x384x128xf32, #tpu.memory_space<vmem>>, vector<1x384x128xf32>
    %59 = vector.shape_cast %58 : vector<1x384x128xf32> to vector<384x128xf32>
    %cst_53 = arith.constant dense<0.000000e+00> : vector<16x128xf32>
    %60 = tpu.matmul %57, %59, %cst_53 {dimension_numbers = #tpu.dot_dimension_numbers<[1], [0], [0], [1], [0, 0, 1, 1], [], []>} : vector<16x384xf32>, vector<384x128xf32>, vector<16x128xf32> -> vector<16x128xf32>
    %c1_54 = arith.constant 1 : index
    %c0_55 = arith.constant 0 : index
    %c0_56 = arith.constant 0 : index
    %61 = vector.load %arg6[%c1_54, %c0_55, %c0_56] : memref<2x1x128xf32, #tpu.memory_space<vmem>>, vector<1x1x128xf32>
    %62 = vector.shape_cast %61 : vector<1x1x128xf32> to vector<1x128xf32>
    %63 = vector.broadcast %62 : vector<1x128xf32> to vector<16x128xf32>
    %64 = arith.addf %60, %63 : vector<16x128xf32>
    %cst_57 = arith.constant 0.000000e+00 : f32
    %65 = vector.broadcast %cst_57 : f32 to vector<16x128xf32>
    %66 = arith.cmpf ogt, %64, %65 : vector<16x128xf32>
    %cst_58 = arith.constant 1.000000e-01 : f32
    %67 = vector.broadcast %cst_58 : f32 to vector<16x128xf32>
    %68 = arith.mulf %67, %64 : vector<16x128xf32>
    %69 = arith.select %66, %64, %68 : vector<16x128xi1>, vector<16x128xf32>
    %c0_59 = arith.constant 0 : index
    %c0_60 = arith.constant 0 : index
    %c0_61 = arith.constant 0 : index
    %70 = vector.load %arg7[%c0_59, %c0_60, %c0_61] : memref<1x16x128xf32, #tpu.memory_space<vmem>>, vector<1x16x128xf32>
    %71 = vector.shape_cast %70 : vector<1x16x128xf32> to vector<16x128xf32>
    %72 = vector.shape_cast %69 : vector<16x128xf32> to vector<1x16x128xf32>
    tpu.vector_store %arg7[%c0_59, %c0_60, %c0_61], %72 {strides = array<i32>} : memref<1x16x128xf32, #tpu.memory_space<vmem>>, vector<1x16x128xf32>,
    return
  }
  func.func @transform_0(%arg0: i32) -> (i32, i32, i32) {
    %c0_i32 = arith.constant 0 : i32
    %c0_i32_0 = arith.constant 0 : i32
    %c0_i32_1 = arith.constant 0 : i32
    return %arg0, %c0_i32, %c0_i32_0 : i32, i32, i32
  }
  func.func @transform_1(%arg0: i32) -> (i32, i32, i32) {
    %c0_i32 = arith.constant 0 : i32
    %c0_i32_0 = arith.constant 0 : i32
    %c0_i32_1 = arith.constant 0 : i32
    %c0_i32_2 = arith.constant 0 : i32
    return %c0_i32, %c0_i32_0, %c0_i32_1 : i32, i32, i32
  }
  func.func @transform_2(%arg0: i32) -> (i32, i32, i32) {
    %c0_i32 = arith.constant 0 : i32
    %c0_i32_0 = arith.constant 0 : i32
    %c0_i32_1 = arith.constant 0 : i32
    %c0_i32_2 = arith.constant 0 : i32
    return %c0_i32, %c0_i32_0, %c0_i32_1 : i32, i32, i32
  }
  func.func @transform_3(%arg0: i32) -> (i32, i32, i32) {
    %c0_i32 = arith.constant 0 : i32
    %c0_i32_0 = arith.constant 0 : i32
    %c0_i32_1 = arith.constant 0 : i32
    %c0_i32_2 = arith.constant 0 : i32
    return %c0_i32, %c0_i32_0, %c0_i32_1 : i32, i32, i32
  }
  func.func @transform_4(%arg0: i32) -> (i32, i32, i32) {
    %c0_i32 = arith.constant 0 : i32
    %c0_i32_0 = arith.constant 0 : i32
    %c0_i32_1 = arith.constant 0 : i32
    %c0_i32_2 = arith.constant 0 : i32
    return %c0_i32, %c0_i32_0, %c0_i32_1 : i32, i32, i32
  }
  func.func @transform_5(%arg0: i32) -> (i32, i32, i32) {
    %c0_i32 = arith.constant 0 : i32
    %c0_i32_0 = arith.constant 0 : i32
    %c0_i32_1 = arith.constant 0 : i32
    %c0_i32_2 = arith.constant 0 : i32
    return %c0_i32, %c0_i32_0, %c0_i32_1 : i32, i32, i32
  }
  func.func @transform_6(%arg0: i32) -> (i32, i32, i32) {
    %c0_i32 = arith.constant 0 : i32
    %c0_i32_0 = arith.constant 0 : i32
    %c0_i32_1 = arith.constant 0 : i32
    return %arg0, %c0_i32, %c0_i32_0 : i32, i32, i32
  }
}

</mosaic_0001>

<bundles_post_ra>
// kernel: tile.23
= control target key start
LH: loop header
LB: loop body
LE: loop exit
PB: predicated region body
PF: predicated region fallthrough
CT: control target
= control target key end

     0   :  { %s28_s0 = inlined_call_operand.vmem [shape: f32[8], index: 0, kind: input, shape index: {}]   ;;  %s29_s1 = inlined_call_operand.vmem [shape: f32[16,8], index: 1, kind: output, shape index: {}]  }
   0x1   :  { %v4_v0 = vld [vmem:[%s28_s0] ss:$0 sm:$0xff] }
   0x2   :  { %5 = vst [vmem:[%s29_s1] sm:$0xff] %v4_v0 }
   0x3   :  { %8 = vst [vmem:[%s29_s1 + $0x8] sm:$0xff] %v4_v0 }

// kernel: tile.36
= control target key start
LH: loop header
LB: loop body
LE: loop exit
PB: predicated region body
PF: predicated region fallthrough
CT: control target
= control target key end

     0   :  { %s131_s10 = smov 120   ;;  %s132_s11 = smov 104   ;;  %vm3_vm0 = vcmask 64512   ;;  %vm9_vm1 = vcmask 1048512   ;;  %vm15_vm2 = vcmask 982912   ;;  %vm21_vm3 = vcmask 917312   ;;  %s207_s0 = inlined_call_operand.vmem [shape: f32[16,8], index: 0, kind: input, shape index: {}]   ;;  %s208_s1 = inlined_call_operand.vmem [shape: f32[1,1,128], index: 1, kind: output, shape index: {}]  }
   0x1   :  { %v101_v0 = vld [vmem:[%s207_s0 + $0xf] sm:$0x1]   ;;  %v103_v1 = vld [vmem:[%s207_s0 + $0xd] sm:$0x1]   ;;  %v105_v2 = vld [vmem:[%s207_s0 + $0xb] sm:$0x1]  }
   0x2   :  { %7 = vrot.lane.b32.xlu0 %v101_v0, %s131_s10  ;;  %19 = vrot.lane.b32.xlu1 %v103_v1, %s132_s11  ;;  %s133_s14 = smov 88   ;;  %v102_v3 = vld [vmem:[%s207_s0 + $0xe] sm:$0x1]   ;;  %v104_v4 = vld [vmem:[%s207_s0 + $0xc] sm:$0x1]   ;;  %s134_s19 = smov 112  }
   0x3   :  { %31 = vrot.lane.b32.xlu2 %v105_v2, %s133_s14  ;;  %s135_s20 = smov 96   ;;  %v106_v5 = vld [vmem:[%s207_s0 + $0xa] sm:$0x1]   ;;  %s136_s23 = smov 80   ;;  %v107_v6 = vld [vmem:[%s207_s0 + $0x9] sm:$0x1]  }
   0x4   :  { %v108_v7 = vld [vmem:[%s207_s0 + $0x8] sm:$0x1]   ;;  %s137_s28 = smov 72   ;;  %s138_s29 = smov 64   ;;  %v109_v8 = vld [vmem:[%s207_s0 + $0x7] sm:$0x1]  }
   0x5   :  { %s139_s3 = smov 56   ;;  %v110_v9 = vld [vmem:[%s207_s0 + $0x6] sm:$0x1]   ;;  %v111_v10 = vld [vmem:[%s207_s0 + $0x5] sm:$0x1]   ;;  %s140_s8 = smov 48  }
   0x6   :  { %s141_s9 = smov 40   ;;  %v112_v11 = vld [vmem:[%s207_s0 + $0x4] sm:$0x1]   ;;  %s142_s12 = smov 32   ;;  %v113_v12 = vld [vmem:[%s207_s0 + $0x3] sm:$0x1]  }
   0x7   :  { %v114_v13 = vld [vmem:[%s207_s0 + $0x2] sm:$0x1]   ;;  %s143_s17 = smov 24   ;;  %s144_s18 = smov 16   ;;  %v115_v14 = vld [vmem:[%s207_s0 + $0x1] sm:$0x1]  }
   0x8   :  { %s145_s21 = smov 8   ;;  %v2_v15 = vld [vmem:[%s207_s0] sm:$0x1]   ;;  %vm27_vm4 = vcmask 851712   ;;  %vm33_vm5 = vcmask 786112   ;;  %vm39_vm6 = vcmask 720512  }
   0x9   :  { %4 = vst.msk [vmem:[#allocation0] sm:$0x1] %vm3_vm0, %v2_v15   ;;  %vm45_vm7 = vcmask 654912   ;;  %vm51_vm8 = vcmask 589312   ;;  %vm57_vm9 = vcmask 523712   ;;  %vm63_vm10 = vcmask 458112  }
   0xa   :  { %13 = vrot.lane.b32.xlu0 %v102_v3, %s134_s19  ;;  %25 = vrot.lane.b32.xlu1 %v104_v4, %s135_s20  ;;  %vm69_vm11 = vcmask 392512   ;;  %vm75_vm12 = vcmask 326912   ;;  %vm81_vm13 = vcmask 261312   ;;  %vm87_vm14 = vcmask 195712  }
   0xb   :  { %37 = vrot.lane.b32.xlu2 %v106_v5, %s136_s23  ;;  %vm93_vm15 = vcmask 130112  }
  0x12   :  { %43 = vrot.lane.b32.xlu0 %v107_v6, %s137_s28  ;;  %49 = vrot.lane.b32.xlu1 %v108_v7, %s138_s29 }
  0x13   :  { %55 = vrot.lane.b32.xlu2 %v109_v8, %s139_s3 }
  0x1a   :  { %61 = vrot.lane.b32.xlu0 %v110_v9, %s140_s8  ;;  %67 = vrot.lane.b32.xlu1 %v111_v10, %s141_s9 }
  0x1b   :  { %73 = vrot.lane.b32.xlu2 %v112_v11, %s142_s12 }
  0x22   :  { %79 = vrot.lane.b32.xlu0 %v113_v12, %s143_s17  ;;  %85 = vrot.lane.b32.xlu1 %v114_v13, %s144_s18 }
  0x23   :  { %91 = vrot.lane.b32.xlu2 %v115_v14, %s145_s21 }
  0x5d   :  { %v32_v16 = vpop.permute.xlu2 %31  }
  0x65   :  { %v38_v17 = vpop.permute.xlu2 %37  }
  0x6d   :  { %v56_v18 = vpop.permute.xlu2 %55  }
  0x74   :  { %v8_v19 = vpop.permute.xlu0 %7   ;;  %v20_v20 = vpop.permute.xlu1 %19  }
  0x75   :  { %10 = vst.msk [vmem:[#allocation0] sm:$0x1] %vm9_vm1, %v8_v19   ;;  %v74_v21 = vpop.permute.xlu2 %73  }
  0x7c   :  { %v14_v22 = vpop.permute.xlu0 %13   ;;  %v26_v23 = vpop.permute.xlu1 %25  }
  0x7d   :  { %16 = vst.msk [vmem:[#allocation0] sm:$0x1] %vm15_vm2, %v14_v22   ;;  %v92_v24 = vpop.permute.xlu2 %91  }
  0x7e   :  { %22 = vst.msk [vmem:[#allocation0] sm:$0x1] %vm21_vm3, %v20_v20  }
  0x7f   :  { %28 = vst.msk [vmem:[#allocation0] sm:$0x1] %vm27_vm4, %v26_v23  }
  0x80   :  { %34 = vst.msk [vmem:[#allocation0] sm:$0x1] %vm33_vm5, %v32_v16  }
  0x81   :  { %40 = vst.msk [vmem:[#allocation0] sm:$0x1] %vm39_vm6, %v38_v17  }
  0x84   :  { %v44_v25 = vpop.permute.xlu0 %43   ;;  %v50_v26 = vpop.permute.xlu1 %49  }
  0x85   :  { %46 = vst.msk [vmem:[#allocation0] sm:$0x1] %vm45_vm7, %v44_v25  }
  0x86   :  { %52 = vst.msk [vmem:[#allocation0] sm:$0x1] %vm51_vm8, %v50_v26  }
  0x87   :  { %58 = vst.msk [vmem:[#allocation0] sm:$0x1] %vm57_vm9, %v56_v18  }
  0x8c   :  { %v62_v27 = vpop.permute.xlu0 %61   ;;  %v68_v28 = vpop.permute.xlu1 %67  }
  0x8d   :  { %64 = vst.msk [vmem:[#allocation0] sm:$0x1] %vm63_vm10, %v62_v27  }
  0x8e   :  { %70 = vst.msk [vmem:[#allocation0] sm:$0x1] %vm69_vm11, %v68_v28  }
  0x8f   :  { %76 = vst.msk [vmem:[#allocation0] sm:$0x1] %vm75_vm12, %v74_v21  }
  0x94   :  { %v80_v29 = vpop.permute.xlu0 %79   ;;  %v86_v30 = vpop.permute.xlu1 %85  }
  0x95   :  { %82 = vst.msk [vmem:[#allocation0] sm:$0x1] %vm81_vm13, %v80_v29  }
  0x96   :  { %88 = vst.msk [vmem:[#allocation0] sm:$0x1] %vm87_vm14, %v86_v30  }
  0x97   :  { %94 = vst.msk [vmem:[#allocation0] sm:$0x1] %vm93_vm15, %v92_v24  }
  0x9e   :  { %v97_v31 = vld [vmem:[#allocation0] sm:$0x1] }
  0x9f   :  { %100 = vst [vmem:[%s208_s1] sm:$0x1] %v97_v31 }

// kernel: conv_block_forward.1
= control target key start
LH: loop header
LB: loop body
LE: loop exit
PB: predicated region body
PF: predicated region fallthrough
CT: control target
= control target key end

     0   :  { %s982_s21 = smov 0   ;;  %s1456_s0 = inlined_call_operand.vmem [shape: f32[2,16,128], index: 0, kind: input, shape index: {}]   ;;  %s1457_s1 = inlined_call_operand.vmem [shape: f32[2,128,128], index: 1, kind: input, shape index: {}]   ;;  %s1458_s2 = inlined_call_operand.vmem [shape: f32[2,1,128], index: 2, kind: input, shape index: {}]   ;;  %s1459_s3 = inlined_call_operand.vmem [shape: f32[3,16,16], index: 3, kind: input, shape index: {}]   ;;  %s1460_s4 = inlined_call_operand.vmem [shape: f32[2,384,128], index: 4, kind: input, shape index: {}]   ;;  %s1461_s5 = inlined_call_operand.vmem [shape: f32[2,1,128], index: 5, kind: input, shape index: {}]   ;;  %s1462_s6 = inlined_call_operand.vmem [shape: f32[2,16,128], index: 6, kind: output, shape index: {}]  }
   0x1 LB: > { %s832_s22 = sadd.s32 4294967295, %s945_s21   ;;  %p836_p0 = scmp.ge.s32.totalorder %s945_s21, 1  ;;  %s945_s21 = sphi %s982_s21, %s16_s21  }
   0x2   : > { %p212_p1 = scmp.lt.s32.totalorder %s945_s21, 3 }
   0x4   : > { %p213_p2 = pnand %p836_p0, %p212_p1 }
   0x5   : > { %p242_p3 = scmp.lt.s32.totalorder (!%p213_p2), %s832_s22, 1 }
   0x6   : > { %216 = sbr.rel (%p213_p2) target bundleno = 878 (0x36e), region = 44 }
   0xb   : > { %v269_v0 = vld [vmem:[%s1457_s1 + $0x78] sm:$0xff]  ;;  %v268_v1 = vld [vmem:[%s1457_s1 + $0x70] sm:$0xff]  ;;  %v267_v2 = vld [vmem:[%s1457_s1 + $0x68] sm:$0xff]  ;;  %s1464_s22 = smov (!%p242_p3, %s832_s22), 1  ;;  %vm305_vm2 = vcmask 130048  }
   0xc   : > { %274 = vmatpush.msra.mxu0 %v269_v0  ;;  %v266_v3 = vld [vmem:[%s1457_s1 + $0x60] sm:$0xff]  ;;  %v265_v4 = vld [vmem:[%s1457_s1 + $0x58] sm:$0xff]  ;;  %v264_v5 = vld [vmem:[%s1457_s1 + $0x50] sm:$0xff]  ;;  %s925_s27 = sshll.u32 %s1464_s22, 4 }
   0xd   : > { %v263_v6 = vld [vmem:[%s1457_s1 + $0x48] sm:$0xff]  ;;  %v262_v7 = vld [vmem:[%s1457_s1 + $0x40] sm:$0xff]  ;;  %v261_v8 = vld [vmem:[%s1457_s1 + $0x38] sm:$0xff]  ;;  %s246_s10 = scalar_lea.vmem %s1456_s0, %s925_s27  ;;  %s251_s7 = scalar_lea.vmem %s1462_s6, %s925_s27 }
   0xe   : > { %275 = vmatpush.msra.mxu0 %v268_v1  ;;  %v260_v9 = vld [vmem:[%s1457_s1 + $0x30] sm:$0xff]  ;;  %v259_v10 = vld [vmem:[%s1457_s1 + $0x28] sm:$0xff]  ;;  %v258_v11 = vld [vmem:[%s1457_s1 + $0x20] sm:$0xff] }
   0xf   : > { %v257_v12 = vld [vmem:[%s1457_s1 + $0x18] sm:$0xff]  ;;  %v256_v13 = vld [vmem:[%s1457_s1 + $0x10] sm:$0xff]  ;;  %v255_v14 = vld [vmem:[%s1457_s1 + $0x8] sm:$0xff] }
  0x10   : > { %276 = vmatpush.msra.mxu0 %v267_v2  ;;  %v254_v15 = vld [vmem:[%s1457_s1] sm:$0xff]  ;;  %v253_v17 = vld [vmem:[%s246_s10 + $0x8] sm:$0xff]  ;;  %v414_v18 = vld [vmem:[%s1460_s4 + $0x78] sm:$0xff] }
  0x11   : > { %v252_v16 = vld [vmem:[%s246_s10] sm:$0xff]  ;;  %451 = vmatpush.msra.mxu1 %v414_v18  ;;  %v413_v19 = vld [vmem:[%s1460_s4 + $0x70] sm:$0xff]  ;;  %v412_v20 = vld [vmem:[%s1460_s4 + $0x68] sm:$0xff] }
  0x12   : > { %277 = vmatpush.msra.mxu0 %v266_v3  ;;  %v411_v21 = vld [vmem:[%s1460_s4 + $0x60] sm:$0xff]  ;;  %v410_v23 = vld [vmem:[%s1460_s4 + $0x58] sm:$0xff]  ;;  %v409_v25 = vld [vmem:[%s1460_s4 + $0x50] sm:$0xff] }
  0x13   : > { %452 = vmatpush.msra.mxu1 %v413_v19  ;;  %v935_v24 = vld [vmem:[%s1458_s2] ss:$0 sm:$0xff]  ;;  %v408_v26 = vld [vmem:[%s1460_s4 + $0x48] sm:$0xff]  ;;  %v406_v31 = vld [vmem:[%s1460_s4 + $0x38] sm:$0xff] }
  0x14   : > { %278 = vmatpush.msra.mxu0 %v265_v4  ;;  %v407_v28 = vld [vmem:[%s1460_s4 + $0x40] sm:$0xff]  ;;  %v405_v34 = vld [vmem:[%s1460_s4 + $0x30] sm:$0xff]  ;;  %v430_v40 = vld [vmem:[%s1460_s4 + $0xf8] sm:$0xff] }
  0x15   : > { %453 = vmatpush.msra.mxu1 %v412_v20  ;;  %v1082_v36 = vld [vmem:[%s1459_s3 + $0x10] sm:$0xff]  ;;  %v1087_v38 = vld [vmem:[%s1459_s3 + $0x20] sm:$0xff]  ;;  %v446_v41 = vld [vmem:[%s1460_s4 + $0x178] sm:$0xff] }
  0x16   : > { %279 = vmatpush.msra.mxu0 %v264_v5  ;;  %v1092_v39 = vld [vmem:[%s1459_s3] sm:$0xff]  ;;  %v404_v42 = vld [vmem:[%s1460_s4 + $0x28] sm:$0xff]  ;;  %v429_v43 = vld [vmem:[%s1460_s4 + $0xf0] sm:$0xff] }
  0x17   : > { %454 = vmatpush.msra.mxu1 %v411_v21  ;;  %v445_v44 = vld [vmem:[%s1460_s4 + $0x170] sm:$0xff]  ;;  %v403_v45 = vld [vmem:[%s1460_s4 + $0x20] sm:$0xff]  ;;  %v428_v46 = vld [vmem:[%s1460_s4 + $0xe8] sm:$0xff] }
  0x18   : > { %280 = vmatpush.msra.mxu0 %v263_v6  ;;  %v444_v47 = vld [vmem:[%s1460_s4 + $0x168] sm:$0xff]  ;;  %v402_v48 = vld [vmem:[%s1460_s4 + $0x18] sm:$0xff]  ;;  %v443_v50 = vld [vmem:[%s1460_s4 + $0x160] sm:$0xff] }
  0x19   : > { %455 = vmatpush.msra.mxu1 %v410_v23  ;;  %v1130_v49 = vld [vmem:[%s1459_s3 + $0x18] sm:$0xff]  ;;  %v1138_v51 = vld [vmem:[%s1459_s3 + $0x28] sm:$0xff]  ;;  %v427_v53 = vld [vmem:[%s1460_s4 + $0xe0] sm:$0xff] }
  0x1a   : > { %281 = vmatpush.msra.mxu0 %v262_v7  ;;  %v1143_v52 = vld [vmem:[%s1459_s3 + $0x8] sm:$0xff]  ;;  %v442_v54 = vld [vmem:[%s1460_s4 + $0x158] sm:$0xff]  ;;  %v441_v56 = vld [vmem:[%s1460_s4 + $0x150] sm:$0xff] }
  0x1b   : > { %456 = vmatpush.msra.mxu1 %v409_v25  ;;  %v426_v55 = vld [vmem:[%s1460_s4 + $0xd8] sm:$0xff]  ;;  %v425_v57 = vld [vmem:[%s1460_s4 + $0xd0] sm:$0xff]  ;;  %v440_v58 = vld [vmem:[%s1460_s4 + $0x148] sm:$0xff] }
  0x1c   : > { %282 = vmatpush.msra.mxu0 %v261_v8  ;;  %v424_v59 = vld [vmem:[%s1460_s4 + $0xc8] sm:$0xff]  ;;  %v439_v60 = vld [vmem:[%s1460_s4 + $0x140] sm:$0xff]  ;;  %v438_v62 = vld [vmem:[%s1460_s4 + $0x138] sm:$0xff] }
  0x1d   : > { %457 = vmatpush.msra.mxu1 %v408_v26  ;;  %v423_v61 = vld [vmem:[%s1460_s4 + $0xc0] sm:$0xff]  ;;  %v422_v63 = vld [vmem:[%s1460_s4 + $0xb8] sm:$0xff]  ;;  %v437_v0 = vld [vmem:[%s1460_s4 + $0x130] sm:$0xff] }
  0x1e   : > { %283 = vmatpush.msra.mxu0 %v260_v9  ;;  %v421_v1 = vld [vmem:[%s1460_s4 + $0xb0] sm:$0xff]  ;;  %v436_v2 = vld [vmem:[%s1460_s4 + $0x128] sm:$0xff]  ;;  %v435_v4 = vld [vmem:[%s1460_s4 + $0x120] sm:$0xff] }
  0x1f   : > { %458 = vmatpush.msra.mxu1 %v407_v28  ;;  %v420_v3 = vld [vmem:[%s1460_s4 + $0xa8] sm:$0xff]  ;;  %v419_v5 = vld [vmem:[%s1460_s4 + $0xa0] sm:$0xff]  ;;  %v434_v6 = vld [vmem:[%s1460_s4 + $0x118] sm:$0xff] }
  0x20   : > { %284 = vmatpush.msra.mxu0 %v259_v10  ;;  %v418_v7 = vld [vmem:[%s1460_s4 + $0x98] sm:$0xff]  ;;  %v433_v8 = vld [vmem:[%s1460_s4 + $0x110] sm:$0xff]  ;;  %v416_v10 = vld [vmem:[%s1460_s4 + $0x88] sm:$0xff] }
  0x21   : > { %459 = vmatpush.msra.mxu1 %v406_v31  ;;  %v417_v9 = vld [vmem:[%s1460_s4 + $0x90] sm:$0xff]  ;;  %v864_v19 = vld [vmem:[%s1457_s1 + $0xe8] sm:$0xff]  ;;  %v863_v20 = vld [vmem:[%s1457_s1 + $0xe0] sm:$0xff] }
  0x22   : > { %285 = vmatpush.msra.mxu0 %v258_v11  ;;  %v401_v11 = vld [vmem:[%s1460_s4 + $0x10] sm:$0xff]  ;;  %v862_v21 = vld [vmem:[%s1457_s1 + $0xd8] sm:$0xff]  ;;  %v860_v23 = vld [vmem:[%s1457_s1 + $0xc8] sm:$0xff] }
  0x23   : > { %460 = vmatpush.msra.mxu1 %v405_v34  ;;  %v865_v18 = vld [vmem:[%s1457_s1 + $0xf0] sm:$0xff]  ;;  %v858_v25 = vld [vmem:[%s1457_s1 + $0xb8] sm:$0xff]  ;;  %v856_v28 = vld [vmem:[%s1457_s1 + $0xa8] sm:$0xff] }
  0x24   : > { %286 = vmatpush.msra.mxu0 %v257_v12  ;;  %v415_v12 = vld [vmem:[%s1460_s4 + $0x80] sm:$0xff]  ;;  %v857_v26 = vld [vmem:[%s1457_s1 + $0xb0] sm:$0xff] }
  0x25   : > { %461 = vmatpush.msra.mxu1 %v404_v42  ;;  %v855_v34 = vld [vmem:[%s1457_s1 + $0xa0] sm:$0xff] }
  0x26   : > { %287 = vmatpush.msra.mxu0 %v256_v13  ;;  %v432_v13 = vld [vmem:[%s1460_s4 + $0x108] sm:$0xff] }
  0x27   : > { %462 = vmatpush.msra.mxu1 %v403_v45 }
  0x28   : > { %288 = vmatpush.msra.mxu0 %v255_v14  ;;  %v400_v14 = vld [vmem:[%s1460_s4 + $0x8] sm:$0xff] }
  0x29   : > { %463 = vmatpush.msra.mxu1 %v402_v48 }
  0x2a   : > { %289 = vmatpush.msra.mxu0 %v254_v15  ;;  %v431_v15 = vld [vmem:[%s1460_s4 + $0x100] sm:$0xff] }
  0x2b   : > { %290 = vmatmul.f32.vlgmr.msra.gmra.mxu0 %v252_v16  ;;  %464 = vmatpush.msra.mxu1 %v401_v11  ;;  %v399_v16 = vld [vmem:[%s1460_s4] sm:$0xff]  ;;  %v920_v11 = vld [vmem:[%s1460_s4 + $0x2f0] sm:$0xff] }
  0x2d   : > { %465 = vmatpush.msra.mxu1 %v400_v14  ;;  %v902_v14 = vld [vmem:[%s1460_s4 + $0x260] sm:$0xff] }
  0x2f   : > { %466 = vmatpush.msra.mxu1 %v399_v16  ;;  %v917_v16 = vld [vmem:[%s1460_s4 + $0x2d8] sm:$0xff] }
  0x33   : > { %293 = vmatmul.f32.gmra.mxu0 %v253_v17  ;;  %v866_v17 = vld [vmem:[%s1457_s1 + $0xf8] sm:$0xff] }
  0xa8   : > { %v291_v22 = vpop.f32.mrf.mxu0 }
  0xa9   : > { %v292_v27 = vadd.f32 %v935_v24, %v291_v22  ;;  %v861_v22 = vld [vmem:[%s1457_s1 + $0xd0] sm:$0xff] }
  0xab   : > { %v299_v32 = vmul.f32 0.1, %v292_v27  ;;  %vm297_vm1 = vcmp.gt.f32.partialorder %v292_v27, 0.0 }
  0xad   : > { %v301_v37 = vsel %vm297_vm1, %v292_v27, %v299_v32 }
  0xb0   : > { %v294_v29 = vpop.f32.mrf.mxu0 }
  0xb1   : > { %v295_v30 = vadd.f32 %v935_v24, %v294_v29  ;;  %v859_v24 = vld [vmem:[%s1457_s1 + $0xc0] sm:$0xff] }
  0xb3   : > { %v300_v33 = vmul.f32 0.1, %v295_v30  ;;  %vm298_vm0 = vcmp.gt.f32.partialorder %v295_v30, 0.0 }
  0xb5   : > { %v302_v35 = vsel %vm298_vm0, %v295_v30, %v300_v33 }
  0xb6   : > { %326 = vmatpush.msrb.mxu0 %v302_v35  ;;  %358 = vmatpush.msra.mxu2 %v302_v35 }
  0xb7   : > { %390 = vmatpush.msra.mxu3 %v302_v35  ;;  %v854_v35 = vld [vmem:[%s1457_s1 + $0x98] sm:$0xff] }
  0xb8   : > { %327 = vmatpush.msrb.mxu0 %v301_v37  ;;  %359 = vmatpush.msra.mxu2 %v301_v37 }
  0xb9   : > { %391 = vmatpush.msra.mxu3 %v301_v37  ;;  %845 = vmatmul.msk.f32.vlgmr.msra.gmra.mxu2 %vm305_vm2, %v1082_v36  ;;  %v853_v37 = vld [vmem:[%s1457_s1 + $0x90] sm:$0xff] }
  0xba   : > { %849 = vmatmul.msk.f32.vlgmr.msra.gmra.mxu3 %vm305_vm2, %v1087_v38  ;;  %841 = vmatmul.msk.f32.vlgmr.msrb.gmra.mxu0 %vm305_vm2, %v1092_v39 }
  0xbb   : > { %474 = vmatpush.msrb.mxu2 %v430_v40  ;;  %497 = vmatpush.msrb.mxu3 %v446_v41  ;;  %v852_v40 = vld [vmem:[%s1457_s1 + $0x88] sm:$0xff]  ;;  %v851_v41 = vld [vmem:[%s1457_s1 + $0x80] sm:$0xff] }
  0xbc   : > { %548 = vmatpush.msra.mxu0 %v866_v17  ;;  %v901_v17 = vld [vmem:[%s1460_s4 + $0x258] sm:$0xff] }
  0xbd   : > { %475 = vmatpush.msrb.mxu2 %v429_v43  ;;  %498 = vmatpush.msrb.mxu3 %v445_v44  ;;  %v936_v43 = vld [vmem:[%s1461_s5] ss:$0 sm:$0xff] }
  0xbe   : > { %549 = vmatpush.msra.mxu0 %v865_v18  ;;  %v885_v18 = vld [vmem:[%s1460_s4 + $0x1d8] sm:$0xff] }
  0xbf   : > { %476 = vmatpush.msrb.mxu2 %v428_v46  ;;  %499 = vmatpush.msrb.mxu3 %v444_v47 }
  0xc0   : > { %550 = vmatpush.msra.mxu0 %v864_v19  ;;  %v915_v19 = vld [vmem:[%s1460_s4 + $0x2c8] sm:$0xff] }
  0xc1   : > { %846 = vmatmul.msk.f32.gmra.mxu2 %vm305_vm2, %v1130_v49  ;;  %500 = vmatpush.msrb.mxu3 %v443_v50 }
  0xc2   : > { %850 = vmatmul.msk.f32.gmra.mxu3 %vm305_vm2, %v1138_v51  ;;  %842 = vmatmul.msk.f32.gmra.mxu0 %vm305_vm2, %v1143_v52 }
  0xc3   : > { %477 = vmatpush.msrb.mxu2 %v427_v53  ;;  %501 = vmatpush.msrb.mxu3 %v442_v54 }
  0xc4   : > { %551 = vmatpush.msra.mxu0 %v863_v20  ;;  %v899_v20 = vld [vmem:[%s1460_s4 + $0x248] sm:$0xff] }
  0xc5   : > { %478 = vmatpush.msrb.mxu2 %v426_v55  ;;  %502 = vmatpush.msrb.mxu3 %v441_v56 }
  0xc6   : > { %552 = vmatpush.msra.mxu0 %v862_v21  ;;  %v883_v21 = vld [vmem:[%s1460_s4 + $0x1c8] sm:$0xff] }
  0xc7   : > { %479 = vmatpush.msrb.mxu2 %v425_v57  ;;  %503 = vmatpush.msrb.mxu3 %v440_v58 }
  0xc8   : > { %553 = vmatpush.msra.mxu0 %v861_v22  ;;  %v914_v22 = vld [vmem:[%s1460_s4 + $0x2c0] sm:$0xff] }
  0xc9   : > { %480 = vmatpush.msrb.mxu2 %v424_v59  ;;  %504 = vmatpush.msrb.mxu3 %v439_v60 }
  0xca   : > { %554 = vmatpush.msra.mxu0 %v860_v23  ;;  %v898_v23 = vld [vmem:[%s1460_s4 + $0x240] sm:$0xff] }
  0xcb   : > { %481 = vmatpush.msrb.mxu2 %v423_v61  ;;  %505 = vmatpush.msrb.mxu3 %v438_v62 }
  0xcc   : > { %555 = vmatpush.msra.mxu0 %v859_v24  ;;  %v882_v24 = vld [vmem:[%s1460_s4 + $0x1c0] sm:$0xff] }
  0xcd   : > { %482 = vmatpush.msrb.mxu2 %v422_v63  ;;  %506 = vmatpush.msrb.mxu3 %v437_v0  ;;  %v937_v63 = vld [vmem:[%s1458_s2 + $0x1] ss:$0 sm:$0xff] }
  0xce   : > { %556 = vmatpush.msra.mxu0 %v858_v25  ;;  %v913_v25 = vld [vmem:[%s1460_s4 + $0x2b8] sm:$0xff] }
  0xcf   : > { %483 = vmatpush.msrb.mxu2 %v421_v1  ;;  %507 = vmatpush.msrb.mxu3 %v436_v2 }
  0xd0   : > { %557 = vmatpush.msra.mxu0 %v857_v26  ;;  %v897_v26 = vld [vmem:[%s1460_s4 + $0x238] sm:$0xff] }
  0xd1   : > { %484 = vmatpush.msrb.mxu2 %v420_v3  ;;  %508 = vmatpush.msrb.mxu3 %v435_v4 }
  0xd2   : > { %558 = vmatpush.msra.mxu0 %v856_v28  ;;  %v912_v28 = vld [vmem:[%s1460_s4 + $0x2b0] sm:$0xff] }
  0xd3   : > { %485 = vmatpush.msrb.mxu2 %v419_v5  ;;  %509 = vmatpush.msrb.mxu3 %v434_v6 }
  0xd4   : > { %559 = vmatpush.msra.mxu0 %v855_v34  ;;  %v910_v34 = vld [vmem:[%s1460_s4 + $0x2a0] sm:$0xff] }
  0xd5   : > { %486 = vmatpush.msrb.mxu2 %v418_v7  ;;  %510 = vmatpush.msrb.mxu3 %v433_v8  ;;  %v905_v7 = vld [vmem:[%s1460_s4 + $0x278] sm:$0xff] }
  0xd6   : > { %560 = vmatpush.msra.mxu0 %v854_v35  ;;  %v921_v8 = vld [vmem:[%s1460_s4 + $0x2f8] sm:$0xff]  ;;  %v894_v35 = vld [vmem:[%s1460_s4 + $0x220] sm:$0xff] }
  0xd7   : > { %487 = vmatpush.msrb.mxu2 %v417_v9  ;;  %511 = vmatpush.msrb.mxu3 %v432_v13  ;;  %v889_v9 = vld [vmem:[%s1460_s4 + $0x1f8] sm:$0xff]  ;;  %v918_v13 = vld [vmem:[%s1460_s4 + $0x2e0] sm:$0xff] }
  0xd8   : > { %561 = vmatpush.msra.mxu0 %v853_v37  ;;  %v878_v37 = vld [vmem:[%s1460_s4 + $0x1a0] sm:$0xff] }
  0xd9   : > { %488 = vmatpush.msrb.mxu2 %v416_v10  ;;  %512 = vmatpush.msrb.mxu3 %v431_v15  ;;  %v904_v10 = vld [vmem:[%s1460_s4 + $0x270] sm:$0xff]  ;;  %v886_v15 = vld [vmem:[%s1460_s4 + $0x1e0] sm:$0xff] }
  0xda   : > { %562 = vmatpush.msra.mxu0 %v852_v40  ;;  %v909_v40 = vld [vmem:[%s1460_s4 + $0x298] sm:$0xff] }
  0xdb   : > { %489 = vmatpush.msrb.mxu2 %v415_v12  ;;  %v887_v12 = vld [vmem:[%s1460_s4 + $0x1e8] sm:$0xff] }
  0xdc   : > { %563 = vmatpush.msra.mxu0 %v851_v41  ;;  %v893_v41 = vld [vmem:[%s1460_s4 + $0x218] sm:$0xff] }
 0x137   : > { %v329_v27 = vpop.f32.mrf.mxu0 }
 0x138   : > { %467 = vmatmul.f32.vlgmr.msra.gmra.mxu1 %v329_v27  ;;  %v881_v27 = vld [vmem:[%s1460_s4 + $0x1b8] sm:$0xff] }
 0x13c   : > { %v361_v29 = vpop.f32.mrf.mxu2 }
 0x13d   : > { %490 = vmatmul.f32.vlgmr.msrb.gmra.mxu2 %v361_v29  ;;  %v393_v30 = vpop.f32.mrf.mxu3  ;;  %v896_v29 = vld [vmem:[%s1460_s4 + $0x230] sm:$0xff] }
 0x13e   : > { %513 = vmatmul.f32.vlgmr.msrb.gmra.mxu3 %v393_v30  ;;  %v880_v30 = vld [vmem:[%s1460_s4 + $0x1b0] sm:$0xff] }
 0x13f   : > { %v332_v31 = vpop.f32.mrf.mxu0 }
 0x140   : > { %470 = vmatmul.f32.gmra.mxu1 %v332_v31  ;;  %v911_v31 = vld [vmem:[%s1460_s4 + $0x2a8] sm:$0xff] }
 0x144   : > { %v364_v32 = vpop.f32.mrf.mxu2 }
 0x145   : > { %493 = vmatmul.f32.gmra.mxu2 %v364_v32  ;;  %v396_v33 = vpop.f32.mrf.mxu3  ;;  %v895_v32 = vld [vmem:[%s1460_s4 + $0x228] sm:$0xff] }
 0x146   : > { %516 = vmatmul.f32.gmra.mxu3 %v396_v33  ;;  %v879_v33 = vld [vmem:[%s1460_s4 + $0x1a8] sm:$0xff] }
 0x1b5   : > { %v468_v42 = vpop.f32.mrf.mxu1 }
 0x1b6   : > { %v469_v44 = vadd.f32 %v936_v43, %v468_v42  ;;  %v877_v42 = vld [vmem:[%s1460_s4 + $0x198] sm:$0xff] }
 0x1bd   : > { %v471_v48 = vpop.f32.mrf.mxu1 }
 0x1be   : > { %v472_v54 = vadd.f32 %v936_v43, %v471_v48  ;;  %v908_v43 = vld [vmem:[%s1460_s4 + $0x290] sm:$0xff]  ;;  %v907_v48 = vld [vmem:[%s1460_s4 + $0x288] sm:$0xff] }
 0x1c0   : > { %v491_v45 = vpop.f32.mrf.mxu2 }
 0x1c1   : > { %v492_v46 = vadd.f32 %v491_v45, %v469_v44  ;;  %v514_v47 = vpop.f32.mrf.mxu3  ;;  %v892_v44 = vld [vmem:[%s1460_s4 + $0x210] sm:$0xff]  ;;  %v891_v45 = vld [vmem:[%s1460_s4 + $0x208] sm:$0xff] }
 0x1c3   : > { %v515_v50 = vadd.f32 %v514_v47, %v492_v46  ;;  %v876_v46 = vld [vmem:[%s1460_s4 + $0x190] sm:$0xff]  ;;  %v890_v47 = vld [vmem:[%s1460_s4 + $0x200] sm:$0xff] }
 0x1c5   : > { %vm520_vm3 = vcmp.gt.f32.partialorder %v515_v50, 0.0  ;;  %v522_v53 = vmul.f32 0.1, %v515_v50 }
 0x1c7   : > { %v524_v55 = vsel %vm520_vm3, %v515_v50, %v522_v53  ;;  %v875_v50 = vld [vmem:[%s1460_s4 + $0x188] sm:$0xff]  ;;  %v906_v53 = vld [vmem:[%s1460_s4 + $0x280] sm:$0xff] }
 0x1c8   : > { %v494_v56 = vpop.f32.mrf.mxu2  ;;  %564 = vmatmul.f32.vlgmr.msra.gmra.mxu0 %v524_v55 }
 0x1c9   : > { %v495_v57 = vadd.f32 %v494_v56, %v472_v54  ;;  %v517_v58 = vpop.f32.mrf.mxu3  ;;  %v874_v54 = vld [vmem:[%s1460_s4 + $0x180] sm:$0xff] }
 0x1cb   : > { %v518_v59 = vadd.f32 %v517_v58, %v495_v57 }
 0x1cd   : > { %vm521_vm4 = vcmp.gt.f32.partialorder %v518_v59, 0.0  ;;  %v523_v60 = vmul.f32 0.1, %v518_v59 }
 0x1cf   : > { %v525_v61 = vsel %vm521_vm4, %v518_v59, %v523_v60 }
 0x1d0   : > { %567 = vmatmul.f32.gmra.mxu0 %v525_v61 }
 0x245   : > { %v565_v62 = vpop.f32.mrf.mxu0 }
 0x246   : > { %v566_v0 = vadd.f32 %v937_v63, %v565_v62  ;;  %v938_v62 = vld [vmem:[%s1461_s5 + $0x1] ss:$0 sm:$0xff] }
 0x248   : > { %v573_v3 = vmul.f32 0.1, %v566_v0  ;;  %vm571_vm6 = vcmp.gt.f32.partialorder %v566_v0, 0.0 }
 0x24a   : > { %v575_v6 = vsel %vm571_vm6, %v566_v0, %v573_v3 }
 0x24d   : > { %v568_v1 = vpop.f32.mrf.mxu0 }
 0x24e   : > { %v569_v2 = vadd.f32 %v937_v63, %v568_v1 }
 0x250   : > { %v574_v4 = vmul.f32 0.1, %v569_v2  ;;  %vm572_vm5 = vcmp.gt.f32.partialorder %v569_v2, 0.0 }
 0x252   : > { %v576_v5 = vsel %vm572_vm5, %v569_v2, %v574_v4 }
 0x253   : > { %591 = vmatpush.msrb.mxu1 %v576_v5  ;;  %614 = vmatpush.msra.mxu2 %v576_v5 }
 0x254   : > { %637 = vmatpush.msra.mxu3 %v576_v5 }
 0x255   : > { %592 = vmatpush.msrb.mxu1 %v575_v6  ;;  %615 = vmatpush.msra.mxu2 %v575_v6 }
 0x256   : > { %638 = vmatpush.msra.mxu3 %v575_v6  ;;  %870 = vmatmul.msk.f32.vlgmr.msra.gmra.mxu2 %vm305_vm2, %v1082_v36  ;;  %v888_v36 = vld [vmem:[%s1460_s4 + $0x1f0] sm:$0xff] }
 0x257   : > { %872 = vmatmul.msk.f32.vlgmr.msra.gmra.mxu3 %vm305_vm2, %v1087_v38  ;;  %868 = vmatmul.msk.f32.vlgmr.msrb.gmra.mxu1 %vm305_vm2, %v1092_v39  ;;  %v903_v38 = vld [vmem:[%s1460_s4 + $0x268] sm:$0xff] }
 0x258   : > { %723 = vmatpush.msrb.mxu2 %v905_v7  ;;  %746 = vmatpush.msrb.mxu3 %v921_v8  ;;  %v919_v39 = vld [vmem:[%s1460_s4 + $0x2e8] sm:$0xff] }
 0x259   : > { %700 = vmatpush.msra.mxu1 %v889_v9 }
 0x25a   : > { %724 = vmatpush.msrb.mxu2 %v904_v10  ;;  %747 = vmatpush.msrb.mxu3 %v920_v11 }
 0x25b   : > { %701 = vmatpush.msra.mxu1 %v888_v36 }
 0x25c   : > { %725 = vmatpush.msrb.mxu2 %v903_v38  ;;  %748 = vmatpush.msrb.mxu3 %v919_v39 }
 0x25d   : > { %702 = vmatpush.msra.mxu1 %v887_v12 }
 0x25e   : > { %871 = vmatmul.msk.f32.gmra.mxu2 %vm305_vm2, %v1130_v49  ;;  %749 = vmatpush.msrb.mxu3 %v918_v13  ;;  %v916_v49 = vld [vmem:[%s1460_s4 + $0x2d0] sm:$0xff] }
 0x25f   : > { %873 = vmatmul.msk.f32.gmra.mxu3 %vm305_vm2, %v1138_v51  ;;  %869 = vmatmul.msk.f32.gmra.mxu1 %vm305_vm2, %v1143_v52  ;;  %v900_v51 = vld [vmem:[%s1460_s4 + $0x250] sm:$0xff] }
 0x260   : > { %726 = vmatpush.msrb.mxu2 %v902_v14  ;;  %703 = vmatpush.msra.mxu1 %v886_v15  ;;  %v884_v52 = vld [vmem:[%s1460_s4 + $0x1d0] sm:$0xff] }
 0x261   : > { %750 = vmatpush.msrb.mxu3 %v917_v16 }
 0x262   : > { %727 = vmatpush.msrb.mxu2 %v901_v17  ;;  %704 = vmatpush.msra.mxu1 %v885_v18 }
 0x263   : > { %751 = vmatpush.msrb.mxu3 %v916_v49 }
 0x264   : > { %728 = vmatpush.msrb.mxu2 %v900_v51  ;;  %705 = vmatpush.msra.mxu1 %v884_v52 }
 0x265   : > { %752 = vmatpush.msrb.mxu3 %v915_v19 }
 0x266   : > { %729 = vmatpush.msrb.mxu2 %v899_v20  ;;  %706 = vmatpush.msra.mxu1 %v883_v21 }
 0x267   : > { %753 = vmatpush.msrb.mxu3 %v914_v22 }
 0x268   : > { %730 = vmatpush.msrb.mxu2 %v898_v23  ;;  %707 = vmatpush.msra.mxu1 %v882_v24 }
 0x269   : > { %754 = vmatpush.msrb.mxu3 %v913_v25 }
 0x26a   : > { %731 = vmatpush.msrb.mxu2 %v897_v26  ;;  %708 = vmatpush.msra.mxu1 %v881_v27 }
 0x26b   : > { %755 = vmatpush.msrb.mxu3 %v912_v28 }
 0x26c   : > { %732 = vmatpush.msrb.mxu2 %v896_v29  ;;  %709 = vmatpush.msra.mxu1 %v880_v30 }
 0x26d   : > { %756 = vmatpush.msrb.mxu3 %v911_v31 }
 0x26e   : > { %733 = vmatpush.msrb.mxu2 %v895_v32  ;;  %710 = vmatpush.msra.mxu1 %v879_v33 }
 0x26f   : > { %757 = vmatpush.msrb.mxu3 %v910_v34 }
 0x270   : > { %734 = vmatpush.msrb.mxu2 %v894_v35  ;;  %711 = vmatpush.msra.mxu1 %v878_v37 }
 0x271   : > { %758 = vmatpush.msrb.mxu3 %v909_v40 }
 0x272   : > { %735 = vmatpush.msrb.mxu2 %v893_v41  ;;  %712 = vmatpush.msra.mxu1 %v877_v42 }
 0x273   : > { %759 = vmatpush.msrb.mxu3 %v908_v43 }
 0x274   : > { %736 = vmatpush.msrb.mxu2 %v892_v44  ;;  %713 = vmatpush.msra.mxu1 %v876_v46 }
 0x275   : > { %760 = vmatpush.msrb.mxu3 %v907_v48 }
 0x276   : > { %737 = vmatpush.msrb.mxu2 %v891_v45  ;;  %714 = vmatpush.msra.mxu1 %v875_v50 }
 0x277   : > { %761 = vmatpush.msrb.mxu3 %v906_v53 }
 0x278   : > { %738 = vmatpush.msrb.mxu2 %v890_v47  ;;  %715 = vmatpush.msra.mxu1 %v874_v54 }
 0x2d4   : > { %v594_v55 = vpop.f32.mrf.mxu1 }
 0x2d5   : > { %716 = vmatmul.f32.vlgmr.msra.gmra.mxu1 %v594_v55 }
 0x2d9   : > { %v617_v56 = vpop.f32.mrf.mxu2 }
 0x2da   : > { %739 = vmatmul.f32.vlgmr.msrb.gmra.mxu2 %v617_v56  ;;  %v640_v57 = vpop.f32.mrf.mxu3 }
 0x2db   : > { %762 = vmatmul.f32.vlgmr.msrb.gmra.mxu3 %v640_v57 }
 0x2dc   : > { %v597_v58 = vpop.f32.mrf.mxu1 }
 0x2dd   : > { %719 = vmatmul.f32.gmra.mxu1 %v597_v58 }
 0x2e1   : > { %v620_v59 = vpop.f32.mrf.mxu2 }
 0x2e2   : > { %742 = vmatmul.f32.gmra.mxu2 %v620_v59  ;;  %v643_v60 = vpop.f32.mrf.mxu3 }
 0x2e3   : > { %765 = vmatmul.f32.gmra.mxu3 %v643_v60 }
 0x352   : > { %v717_v61 = vpop.f32.mrf.mxu1 }
 0x353   : > { %v718_v63 = vadd.f32 %v938_v62, %v717_v61 }
 0x35a   : > { %v720_v3 = vpop.f32.mrf.mxu1 }
 0x35b   : > { %v721_v6 = vadd.f32 %v938_v62, %v720_v3 }
 0x35d   : > { %v740_v0 = vpop.f32.mrf.mxu2 }
 0x35e   : > { %v741_v1 = vadd.f32 %v740_v0, %v718_v63  ;;  %v763_v2 = vpop.f32.mrf.mxu3 }
 0x360   : > { %v764_v4 = vadd.f32 %v763_v2, %v741_v1 }
 0x362   : > { %vm769_vm7 = vcmp.gt.f32.partialorder %v764_v4, 0.0  ;;  %v771_v5 = vmul.f32 0.1, %v764_v4 }
 0x364   : > { %v773_v7 = vsel %vm769_vm7, %v764_v4, %v771_v5 }
 0x365   : > { %775 = vst [vmem:[%s251_s7] sm:$0xff] %v773_v7  ;;  %v743_v8 = vpop.f32.mrf.mxu2 }
 0x366   : > { %v744_v9 = vadd.f32 %v743_v8, %v721_v6  ;;  %v766_v10 = vpop.f32.mrf.mxu3 }
 0x368   : > { %v767_v11 = vadd.f32 %v766_v10, %v744_v9 }
 0x36a   : > { %vm770_vm8 = vcmp.gt.f32.partialorder %v767_v11, 0.0  ;;  %v772_v36 = vmul.f32 0.1, %v767_v11 }
 0x36c   : > { %v774_v38 = vsel %vm770_vm8, %v767_v11, %v772_v36 }
 0x36d   : > { %776 = vst [vmem:[%s251_s7 + $0x8] sm:$0xff] %v774_v38 }
 0x36e PF: > { %s16_s21 = sadd.s32 1, %s945_s21  }
 0x36f   : > { %p13_p4 = scmp.ge.s32.totalorder %s16_s21, 4  }
 0x371   :  { %15 = sbr.rel (!%p13_p4) target bundleno = 1 (0x1), region = 80 }

</bundles_post_ra>
